<compile_context>
chip_gen: v5e
topology: v5e:2x2
jax: 0.10.0
libtpu: 0.0.40
codegen_flags: <defaults>
</compile_context>

<pallas_src>
from functools import partial

import jax
import jax.numpy as jnp
from jax.experimental import pallas as pl
from jax.experimental.pallas import tpu as pltpu


_VMEM_BUDGET = 4 * 1024 * 1024   # per x tile -> ~16 MiB with in+out double buffers
_VMEM_LIMIT = 32 * 1024 * 1024


def _num_tensorcores():
    """2 on v7x (2 TensorCores/chip), else 1.  Best-effort; never raises."""
    try:
        kind = jax.devices()[0].device_kind.lower()
    except Exception:
        return 1
    return 2 if ("v7" in kind or "tpu7" in kind) else 1


# --------------------------- fused single-pass path ---------------------------


def _se_fused_kernel(x_ref, w1_ref, b1_ref, w2_ref, b2_ref, o_ref, *, inv_hw):
    # x_ref block: (TB, C, HW).  Read #1: squeeze (global average pool).
    # f32 accumulate, reciprocal multiply by the true 1/(H*W).
    pooled = jnp.sum(x_ref[...].astype(jnp.float32), axis=2) * inv_hw      # (TB, C)

    # Excite: hidden (and C) << 128, so run the matmuls on the VPU as
    # broadcast-mul + sublane reduce; keeps MXU drain off the critical path
    # (kernel is HBM-bound regardless).
    w1 = w1_ref[...].astype(jnp.float32)                                   # (C, hidden)
    w2 = w2_ref[...].astype(jnp.float32)                                   # (hidden, C)
    h = jnp.sum(pooled[:, :, None] * w1[None, :, :], axis=1) + b1_ref[...]
    h = jnp.maximum(h, 0.0)
    s = jnp.sum(h[:, :, None] * w2[None, :, :], axis=1) + b2_ref[...]

    # h_sigmoid: relu6(x + 3) * (1/6) -- reciprocal multiply, no divide.
    gate = jnp.clip(s + 3.0, 0.0, 6.0) * (1.0 / 6.0)                       # (TB, C) f32

    # Read #2 of x: scale.  f32 gate broadcasts (promotes), cast on store.
    o_ref[...] = (x_ref[...] * gate[:, :, None]).astype(o_ref.dtype)


def _choose_tb(b, per_elem_bytes, num_cores):
    tb = max(1, min(b, _VMEM_BUDGET // max(per_elem_bytes, 1)))
    if num_cores > 1 and b >= num_cores:
        # Keep >= num_cores grid steps so both v7x TensorCores get work;
        # on single-TC v5e/v6e we keep the full-budget tile.
        tb = min(tb, -(-b // num_cores))
    return tb


def _se_fused(x3, w1, b1, w2, b2, *, hw):
    b, c, _ = x3.shape
    hidden = w1.shape[1]
    tb = _choose_tb(b, c * hw * x3.dtype.itemsize, _num_tensorcores())
    grid = (pl.cdiv(b, tb),)

    return pl.pallas_call(
        partial(_se_fused_kernel, inv_hw=1.0 / hw),
        out_shape=jax.ShapeDtypeStruct((b, c, hw), x3.dtype),
        grid=grid,
        in_specs=[
            pl.BlockSpec((tb, c, hw), lambda i: (i, 0, 0)),
            pl.BlockSpec((c, hidden), lambda i: (0, 0)),
            pl.BlockSpec((1, hidden), lambda i: (0, 0)),
            pl.BlockSpec((hidden, c), lambda i: (0, 0)),
            pl.BlockSpec((1, c), lambda i: (0, 0)),
        ],
        out_specs=pl.BlockSpec((tb, c, hw), lambda i: (i, 0, 0)),
        compiler_params=pltpu.CompilerParams(
            dimension_semantics=("parallel",),
            vmem_limit_bytes=_VMEM_LIMIT,
        ),
    )(x3, w1, b1.reshape(1, -1), w2, b2.reshape(1, -1))


# ----------------------- two-pass HW-chunked path (big C*HW) ------------------


def _pool_kernel(x_ref, o_ref, acc_ref, *, hw, thw, inv_hw):
    j = pl.program_id(1)

    @pl.when(j == 0)
    def _():
        acc_ref[...] = jnp.zeros_like(acc_ref)

    x = x_ref[...].astype(jnp.float32)                                     # (TB, C, THW)
    if hw % thw != 0:
        # Mask garbage lanes of the trailing partial HW chunk so the pooled
        # mean divides by the true H*W.
        lane = jax.lax.broadcasted_iota(jnp.int32, (1, 1, thw), 2)
        x = jnp.where(j * thw + lane < hw, x, 0.0)
    acc_ref[...] += jnp.sum(x, axis=2, keepdims=True)                      # (TB, C, 1)

    @pl.when(j == pl.num_programs(1) - 1)
    def _():
        o_ref[...] = acc_ref[...] * inv_hw


def _scale_kernel(gate_ref, x_ref, o_ref):
    # gate block (TB, C, 1) f32 broadcasts over the HW chunk; cast on store.
    o_ref[...] = (x_ref[...] * gate_ref[...]).astype(o_ref.dtype)


def _se_two_pass(x3, w1, b1, w2, b2, *, hw, hw_chunk=None):
    b, c, _ = x3.shape
    itemsize = x3.dtype.itemsize
    if hw_chunk is None:
        thw = max(128, (_VMEM_BUDGET // (c * itemsize)) // 128 * 128)
    else:
        thw = hw_chunk
    if thw >= hw:
        thw = hw                                   # single chunk -> full last dim
    tb = 1                                         # bound VMEM per step for huge maps
    grid = (pl.cdiv(b, tb), pl.cdiv(hw, thw))

    # Pass 1: per-(batch, channel) pooled mean; HW chunks on a reduction axis.
    pooled = pl.pallas_call(
        partial(_pool_kernel, hw=hw, thw=thw, inv_hw=1.0 / hw),
        out_shape=jax.ShapeDtypeStruct((b, c, 1), jnp.float32),
        grid=grid,
        in_specs=[pl.BlockSpec((tb, c, thw), lambda i, j: (i, 0, j))],
        out_specs=pl.BlockSpec((tb, c, 1), lambda i, j: (i, 0, 0)),
        scratch_shapes=[pltpu.VMEM((tb, c, 1), jnp.float32)],
        compiler_params=pltpu.CompilerParams(
            dimension_semantics=("parallel", "arbitrary"),
            vmem_limit_bytes=_VMEM_LIMIT,
        ),
    )(x3)

    # Tiny excite ((B, C) matmuls) in plain JAX -- negligible vs HBM traffic.
    y = pooled[:, :, 0]                                                    # (B, C) f32
    y = jnp.maximum(y @ w1.astype(jnp.float32) + b1.astype(jnp.float32), 0.0)
    y = y @ w2.astype(jnp.float32) + b2.astype(jnp.float32)
    gate = (jnp.clip(y + 3.0, 0.0, 6.0) * (1.0 / 6.0))[:, :, None]         # (B, C, 1) f32

    # Pass 2: re-stream x and apply the gate, chunk by chunk.
    return pl.pallas_call(
        _scale_kernel,
        out_shape=jax.ShapeDtypeStruct(x3.shape, x3.dtype),
        grid=grid,
        in_specs=[
            pl.BlockSpec((tb, c, 1), lambda i, j: (i, 0, 0)),
            pl.BlockSpec((tb, c, thw), lambda i, j: (i, 0, j)),
        ],
        out_specs=pl.BlockSpec((tb, c, thw), lambda i, j: (i, 0, j)),
        compiler_params=pltpu.CompilerParams(
            dimension_semantics=("parallel", "parallel"),
            vmem_limit_bytes=_VMEM_LIMIT,
        ),
    )(gate, x3)


# --------------------------------- dispatch -----------------------------------


def se_layer(x, w1, b1, w2, b2, *, force_two_pass=False, hw_chunk=None):
    """SELayer forward.  x: (B, C, H, W); w1: (C, hidden); b1: (hidden,);
    w2: (hidden, C); b2: (C,).  nn.Linear weights are stored pre-transposed."""
    b, c, h, w = x.shape
    hw = h * w
    x3 = x.reshape(b, c, hw)
    per_elem = c * hw * x.dtype.itemsize

    # TODO(synk): for tiny B*C*HW a fused XLA graph beats any pallas_call
    # (launch + pipeline prologue dominate); the kernel path is kept so the
    # demo below exercises it.
    if force_two_pass or per_elem > _VMEM_BUDGET:
        out = _se_two_pass(x3, w1, b1, w2, b2, hw=hw, hw_chunk=hw_chunk)
    else:
        out = _se_fused(x3, w1, b1, w2, b2, hw=hw)
    return out.reshape(b, c, h, w)


def se_layer_ref(x, w1, b1, w2, b2):
    """Pure-JAX reference mirroring the PyTorch forward."""
    y = jnp.mean(x.astype(jnp.float32), axis=(2, 3))                       # (B, C)
    y = jnp.maximum(y @ w1.astype(jnp.float32) + b1.astype(jnp.float32), 0.0)
    y = y @ w2.astype(jnp.float32) + b2.astype(jnp.float32)
    y = jnp.clip(y + 3.0, 0.0, 6.0) / 6.0                                  # h_sigmoid
    return (x * y[:, :, None, None]).astype(x.dtype)


if __name__ == "__main__":
    key = jax.random.PRNGKey(0)

    def make_case(k, b, c, hh, ww, reduction=4):
        hidden = max(1, c // reduction)
        kx, k1, k2, k3, k4 = jax.random.split(k, 5)
        x = jax.random.normal(kx, (b, c, hh, ww), dtype=jnp.float32)
        w1 = jax.random.normal(k1, (c, hidden), dtype=jnp.float32) * 0.2
        b1 = jax.random.normal(k2, (hidden,), dtype=jnp.float32) * 0.1
        w2 = jax.random.normal(k3, (hidden, c), dtype=jnp.float32) * 0.2
        b2 = jax.random.normal(k4, (c,), dtype=jnp.float32) * 0.1
        return x, w1, b1, w2, b2

    k1, k2, k3 = jax.random.split(key, 3)

    # Case 1: fused path, lane-aligned HW (B=4, C=8, H=W=16 -> HW=256).
    args = make_case(k1, 4, 8, 16, 16)
    out = jax.block_until_ready(se_layer(*args))
    ref = se_layer_ref(*args)
    assert out.shape == args[0].shape
    assert jnp.allclose(out, ref, atol=1e-5, rtol=1e-5), "case1 mismatch"

    # Case 2: fused path, HW not a multiple of 128 (masked tail stores, no pad).
    args = make_case(k2, 2, 8, 10, 10)
    out = jax.block_until_ready(se_layer(*args))
    ref = se_layer_ref(*args)
    assert jnp.allclose(out, ref, atol=1e-5, rtol=1e-5), "case2 mismatch"

    # Case 3: two-pass HW-chunked path (forced), partial trailing HW chunk.
    args = make_case(k3, 2, 8, 20, 20)
    out = jax.block_until_ready(se_layer(*args, force_two_pass=True, hw_chunk=256))
    ref = se_layer_ref(*args)
    assert jnp.allclose(out, ref, atol=1e-5, rtol=1e-5), "case3 mismatch"

    print("KERNEL_OK")
</pallas_src>

<mosaic_0001>
module attributes {stable_mosaic.version = 11 : i64} {
  func.func @_se_fused_kernel(%arg0: i32, %arg1: memref<4x8x256xf32, #tpu.memory_space<vmem>>, %arg2: memref<8x2xf32, #tpu.memory_space<vmem>>, %arg3: memref<1x2xf32, #tpu.memory_space<vmem>>, %arg4: memref<2x8xf32, #tpu.memory_space<vmem>>, %arg5: memref<1x8xf32, #tpu.memory_space<vmem>>, %arg6: memref<4x8x256xf32, #tpu.memory_space<vmem>>) attributes {dimension_semantics = [#tpu.dimension_semantics<parallel>], iteration_bounds = array<i64: 1>, scalar_prefetch = 0 : i64, scratch_operands = 0 : i64, tpu.core_type = #tpu.core_type<tc>, window_params = [{transform_indices = @transform_0, window_bounds = array<i64: 4, 8, 256>}, {pipeline_mode = #tpu.pipeline_mode<synchronous>, transform_indices = @transform_1, window_bounds = array<i64: 8, 2>}, {pipeline_mode = #tpu.pipeline_mode<synchronous>, transform_indices = @transform_2, window_bounds = array<i64: 1, 2>}, {pipeline_mode = #tpu.pipeline_mode<synchronous>, transform_indices = @transform_3, window_bounds = array<i64: 2, 8>}, {pipeline_mode = #tpu.pipeline_mode<synchronous>, transform_indices = @transform_4, window_bounds = array<i64: 1, 8>}, {transform_indices = @transform_5, window_bounds = array<i64: 4, 8, 256>}]} {
    %c0 = arith.constant 0 : index
    %c0_0 = arith.constant 0 : index
    %c0_1 = arith.constant 0 : index
    %0 = vector.load %arg1[%c0, %c0_0, %c0_1] : memref<4x8x256xf32, #tpu.memory_space<vmem>>, vector<4x8x256xf32>
    %cst = arith.constant dense<0.000000e+00> : vector<4x8xf32>
    %1 = vector.multi_reduction <add>, %0, %cst [2] : vector<4x8x256xf32> to vector<4x8xf32>
    %cst_2 = arith.constant 3.906250e-03 : f32
    %2 = vector.broadcast %cst_2 : f32 to vector<4x8xf32>
    %3 = arith.mulf %1, %2 : vector<4x8xf32>
    %c0_3 = arith.constant 0 : index
    %c0_4 = arith.constant 0 : index
    %4 = vector.load %arg2[%c0_3, %c0_4] : memref<8x2xf32, #tpu.memory_space<vmem>>, vector<8x2xf32>
    %c0_5 = arith.constant 0 : index
    %c0_6 = arith.constant 0 : index
    %5 = vector.load %arg4[%c0_5, %c0_6] : memref<2x8xf32, #tpu.memory_space<vmem>>, vector<2x8xf32>
    %6 = vector.shape_cast %3 : vector<4x8xf32> to vector<4x8x1xf32>
    %7 = vector.shape_cast %4 : vector<8x2xf32> to vector<1x8x2xf32>
    %8 = vector.broadcast %6 : vector<4x8x1xf32> to vector<4x8x2xf32>
    %9 = vector.broadcast %7 : vector<1x8x2xf32> to vector<4x8x2xf32>
    %10 = arith.mulf %8, %9 : vector<4x8x2xf32>
    %cst_7 = arith.constant dense<0.000000e+00> : vector<4x2xf32>
    %11 = vector.multi_reduction <add>, %10, %cst_7 [1] : vector<4x8x2xf32> to vector<4x2xf32>
    %c0_8 = arith.constant 0 : index
    %c0_9 = arith.constant 0 : index
    %12 = vector.load %arg3[%c0_8, %c0_9] : memref<1x2xf32, #tpu.memory_space<vmem>>, vector<1x2xf32>
    %13 = vector.broadcast %12 : vector<1x2xf32> to vector<4x2xf32>
    %14 = arith.addf %11, %13 : vector<4x2xf32>
    %cst_10 = arith.constant 0.000000e+00 : f32
    %15 = vector.broadcast %cst_10 : f32 to vector<4x2xf32>
    %16 = arith.maximumf %14, %15 : vector<4x2xf32>
    %17 = vector.shape_cast %16 : vector<4x2xf32> to vector<4x2x1xf32>
    %18 = vector.shape_cast %5 : vector<2x8xf32> to vector<1x2x8xf32>
    %19 = vector.broadcast %17 : vector<4x2x1xf32> to vector<4x2x8xf32>
    %20 = vector.broadcast %18 : vector<1x2x8xf32> to vector<4x2x8xf32>
    %21 = arith.mulf %19, %20 : vector<4x2x8xf32>
    %cst_11 = arith.constant dense<0.000000e+00> : vector<4x8xf32>
    %22 = vector.multi_reduction <add>, %21, %cst_11 [1] : vector<4x2x8xf32> to vector<4x8xf32>
    %c0_12 = arith.constant 0 : index
    %c0_13 = arith.constant 0 : index
    %23 = vector.load %arg5[%c0_12, %c0_13] : memref<1x8xf32, #tpu.memory_space<vmem>>, vector<1x8xf32>
    %24 = vector.broadcast %23 : vector<1x8xf32> to vector<4x8xf32>
    %25 = arith.addf %22, %24 : vector<4x8xf32>
    %cst_14 = arith.constant 3.000000e+00 : f32
    %26 = vector.broadcast %cst_14 : f32 to vector<4x8xf32>
    %27 = arith.addf %25, %26 : vector<4x8xf32>
    %cst_15 = arith.constant 0.000000e+00 : f32
    %cst_16 = arith.constant 6.000000e+00 : f32
    %28 = vector.broadcast %cst_15 : f32 to vector<4x8xf32>
    %29 = arith.maximumf %28, %27 : vector<4x8xf32>
    %30 = vector.broadcast %cst_16 : f32 to vector<4x8xf32>
    %31 = arith.minimumf %30, %29 : vector<4x8xf32>
    %cst_17 = arith.constant 0.166666672 : f32
    %32 = vector.broadcast %cst_17 : f32 to vector<4x8xf32>
    %33 = arith.mulf %31, %32 : vector<4x8xf32>
    %c0_18 = arith.constant 0 : index
    %c0_19 = arith.constant 0 : index
    %c0_20 = arith.constant 0 : index
    %34 = vector.load %arg1[%c0_18, %c0_19, %c0_20] : memref<4x8x256xf32, #tpu.memory_space<vmem>>, vector<4x8x256xf32>
    %35 = vector.shape_cast %33 : vector<4x8xf32> to vector<4x8x1xf32>
    %36 = vector.broadcast %35 : vector<4x8x1xf32> to vector<4x8x256xf32>
    %37 = arith.mulf %34, %36 : vector<4x8x256xf32>
    %c0_21 = arith.constant 0 : index
    %c0_22 = arith.constant 0 : index
    %c0_23 = arith.constant 0 : index
    %38 = vector.load %arg6[%c0_21, %c0_22, %c0_23] : memref<4x8x256xf32, #tpu.memory_space<vmem>>, vector<4x8x256xf32>
    tpu.vector_store %arg6[%c0_21, %c0_22, %c0_23], %37 {strides = array<i32>} : memref<4x8x256xf32, #tpu.memory_space<vmem>>, vector<4x8x256xf32>,
    return
  }
  func.func @transform_0(%arg0: i32) -> (i32, i32, i32) {
    %c0_i32 = arith.constant 0 : i32
    %c0_i32_0 = arith.constant 0 : i32
    %c0_i32_1 = arith.constant 0 : i32
    return %arg0, %c0_i32, %c0_i32_0 : i32, i32, i32
  }
  func.func @transform_1(%arg0: i32) -> (i32, i32) {
    %c0_i32 = arith.constant 0 : i32
    %c0_i32_0 = arith.constant 0 : i32
    %c0_i32_1 = arith.constant 0 : i32
    return %c0_i32, %c0_i32_0 : i32, i32
  }
  func.func @transform_2(%arg0: i32) -> (i32, i32) {
    %c0_i32 = arith.constant 0 : i32
    %c0_i32_0 = arith.constant 0 : i32
    %c0_i32_1 = arith.constant 0 : i32
    return %c0_i32, %c0_i32_0 : i32, i32
  }
  func.func @transform_3(%arg0: i32) -> (i32, i32) {
    %c0_i32 = arith.constant 0 : i32
    %c0_i32_0 = arith.constant 0 : i32
    %c0_i32_1 = arith.constant 0 : i32
    return %c0_i32, %c0_i32_0 : i32, i32
  }
  func.func @transform_4(%arg0: i32) -> (i32, i32) {
    %c0_i32 = arith.constant 0 : i32
    %c0_i32_0 = arith.constant 0 : i32
    %c0_i32_1 = arith.constant 0 : i32
    return %c0_i32, %c0_i32_0 : i32, i32
  }
  func.func @transform_5(%arg0: i32) -> (i32, i32, i32) {
    %c0_i32 = arith.constant 0 : i32
    %c0_i32_0 = arith.constant 0 : i32
    %c0_i32_1 = arith.constant 0 : i32
    return %arg0, %c0_i32, %c0_i32_0 : i32, i32, i32
  }
}

</mosaic_0001>

<bundles_post_ra>
// kernel: tpu_custom_call.1
= control target key start
LH: loop header
LB: loop body
LE: loop exit
PB: predicated region body
PF: predicated region fallthrough
CT: control target
= control target key end

     0   :  { %10 = vsyncpa [#allocation3], 0  ;;  %s415_s0 = inlined_call_operand.hbm [shape: f32[4,8,256], index: 0, kind: input, shape index: {}]   ;;  %s416_s1 = inlined_call_operand.vmem [shape: f32[8,2], index: 1, kind: input, shape index: {}]   ;;  %s417_s2 = inlined_call_operand.vmem [shape: f32[1,2], index: 2, kind: input, shape index: {}]   ;;  %s418_s3 = inlined_call_operand.vmem [shape: f32[2,8], index: 3, kind: input, shape index: {}]   ;;  %s419_s4 = inlined_call_operand.vmem [shape: f32[1,8], index: 4, kind: input, shape index: {}]   ;;  %s420_s5 = inlined_call_operand.hbm [shape: f32[4,8,256], index: 5, kind: output, shape index: {}]  }
   0x1   :  { %11 = vsyncpa [#allocation4], 0  ;;  %s16_s20 = sshll.u32 %s415_s0, 4  ;;  %s317_s21 = smov [#allocation2]   ;;  %s17_s20 = int_to_ptr.hbm [resolvable:$true] %s16_s20 }
   0x2   :  { %s18_s22 = sshll.u32 %s317_s21, 4  ;;  %s318_s23 = smov 256   ;;  %s19_s22 = int_to_ptr.vmem [resolvable:$true] %s18_s22 }
   0x3   :  { %s319_s24 = smov 16  }
   0x4   :  { %24 = dma.hbm_to_vmem [thread:$0]  %s17_s20, 1024, %s19_s22, [#allocation3], %s318_s23, %s318_s23, %s319_s24  }
   0x5   :  { %313 = dma.done.wait [#allocation3], 1024  }
   0x6   :  { %314 = vsyncadd [#allocation3], 4294966272  ;;  %v357_v0 = vld [vmem:[#allocation2 + $0x20] sm:$0xff]  ;;  %v359_v1 = vld [vmem:[#allocation2 + $0x28] sm:$0xff]  ;;  %v109_v12 = vlaneseq  ;;  %vm67_vm0 = vcmask 15360   ;;  %vm140_vm1 = vcmask 58368  }
   0x7   :  { %v361_v2 = vld [vmem:[#allocation2] sm:$0xff]  ;;  %v51_v3 = vadd.f32 %v359_v1, %v357_v0  ;;  %v365_v4 = vld [vmem:[#allocation2 + $0x8] sm:$0xff]  ;;  %v369_v6 = vld [vmem:[#allocation2 + $0x30] sm:$0xff]  ;;  %s243_s7 = sshll.u32 %s420_s5, 4  ;;  %s244_s7 = int_to_ptr.hbm [resolvable:$true] %s243_s7 }
   0x8   :  { %v45_v5 = vadd.f32 %v365_v4, %v361_v2  ;;  %v371_v7 = vld [vmem:[#allocation2 + $0x38] sm:$0xff]  ;;  %v373_v8 = vld [vmem:[#allocation2 + $0x10] sm:$0xff]  ;;  %v110_v13 = vshrl.u32 %v109_v12, 7  ;;  %v61_v14 = vld [vmem:[%s416_s1] sm:$0xff] }
   0x9   :  { %52 = vadd.xlane.f32.xlu1 %v51_v3  ;;  %v375_v9 = vld [vmem:[#allocation2 + $0x18] sm:$0xff]  ;;  %v54_v10 = vadd.f32 %v371_v7, %v369_v6  ;;  %v263_v41 = vld [vmem:[%s417_s2] ss:$0 sm:$0xff] }
   0xa   :  { %46 = vadd.xlane.f32.xlu0 %v45_v5  ;;  %v48_v11 = vadd.f32 %v375_v9, %v373_v8  ;;  %260 = vset.pattern.permute.xlu2 %v110_v13  ;;  %v62_v12 = vld [vmem:[%s418_s3] sm:$0x3]  ;;  %s320_s3 = smov [#allocation5]  }
   0xb   :  { %261 = vset.pattern.permute.xlu0 %v110_v13  ;;  %262 = vset.pattern.permute.xlu1 %v110_v13 }
  0x11   :  { %55 = vadd.xlane.f32.xlu1 %v54_v10 }
  0x12   :  { %49 = vadd.xlane.f32.xlu0 %v48_v11 }
  0x7c   :  { %v53_v15 = vpop.xlane.xlu1 %52 }
  0x7d   :  { %v59_v16 = vmul.f32 0.00390625, %v53_v15  ;;  %v47_v17 = vpop.xlane.xlu0 %46 }
  0x7e   :  { %v57_v18 = vmul.f32 0.00390625, %v47_v17 }
  0x7f   :  { %v65_v19 = vmul.f32 %v61_v14, %v59_v16 }
  0x80   :  { %v63_v20 = vmul.f32 %v61_v14, %v57_v18 }
  0x81   :  { %v82_v21 = vsel %vm67_vm0, %v65_v19, 0.0 }
  0x82   :  { %v83_v22 = vrot.slane %v82_v21, 4  ;;  %v68_v23 = vsel %vm67_vm0, %v63_v20, 0.0 }
  0x83   :  { %v69_v24 = vrot.slane %v68_v23, 4 }
  0x84   :  { %v84_v25 = vadd.f32 %v83_v22, %v82_v21  ;;  %v56_v26 = vpop.xlane.xlu1 %55 }
  0x85   :  { %v70_v27 = vadd.f32 %v69_v24, %v68_v23  ;;  %v60_v28 = vmul.f32 0.00390625, %v56_v26  ;;  %v50_v29 = vpop.xlane.xlu0 %49 }
  0x86   :  { %v85_v30 = vrot.slane %v84_v25, 2  ;;  %v58_v31 = vmul.f32 0.00390625, %v50_v29 }
  0x87   :  { %v71_v32 = vrot.slane %v70_v27, 2  ;;  %v66_v33 = vmul.f32 %v61_v14, %v60_v28 }
  0x88   :  { %v86_v34 = vadd.f32 %v85_v30, %v84_v25  ;;  %v64_v35 = vmul.f32 %v61_v14, %v58_v31  ;;  %v264_v25 = vld [vmem:[%s419_s4] ss:$0 sm:$0xff]  ;;  %s241_s4 = sshll.u32 %s320_s3, 4  ;;  %s242_s4 = int_to_ptr.vmem [resolvable:$true] %s241_s4 }
  0x89   :  { %v89_v36 = vsel %vm67_vm0, %v66_v33, 0.0  ;;  %v72_v37 = vadd.f32 %v71_v32, %v70_v27 }
  0x8a   :  { %v90_v38 = vrot.slane %v89_v36, 4  ;;  %v75_v39 = vsel %vm67_vm0, %v64_v35, 0.0  ;;  %v87_v40 = vrot.slane %v86_v34, 1 }
  0x8b   :  { %v76_v42 = vrot.slane %v75_v39, 4  ;;  %v73_v43 = vrot.slane %v72_v37, 1 }
  0x8c   :  { %v91_v44 = vadd.f32 %v90_v38, %v89_v36  ;;  %v88_v45 = vadd.f32 %v87_v40, %v86_v34 }
  0x8d   :  { %v77_v46 = vadd.f32 %v76_v42, %v75_v39  ;;  %v74_v47 = vadd.f32 %v73_v43, %v72_v37 }
  0x8e   :  { %v92_v48 = vrot.slane %v91_v44, 2  ;;  %v102_v49 = vadd.f32 %v263_v41, %v88_v45 }
  0x8f   :  { %v78_v50 = vrot.slane %v77_v46, 2  ;;  %v100_v51 = vadd.f32 %v263_v41, %v74_v47 }
  0x90   :  { %v93_v52 = vadd.f32 %v92_v48, %v91_v44  ;;  %v106_v53 = vmax.f32 %v102_v49, 0.0 }
  0x91   :  { %v79_v54 = vadd.f32 %v78_v50, %v77_v46  ;;  %v104_v55 = vmax.f32 %v100_v51, 0.0 }
  0x92   :  { %v122_v56 = vperm.slane %v106_v53, 0  ;;  %v94_v57 = vrot.slane %v93_v52, 1 }
  0x93   :  { %v108_v58 = vperm.slane %v104_v55, 0  ;;  %v80_v59 = vrot.slane %v79_v54, 1 }
  0x94   :  { %127 = vperm.xlu0 %261, %v122_v56   ;;  %v95_v60 = vadd.f32 %v94_v57, %v93_v52 }
  0x95   :  { %113 = vperm.xlu2 %260, %v108_v58   ;;  %v81_v61 = vadd.f32 %v80_v59, %v79_v54 }
  0x96   :  { %v103_v62 = vadd.f32 %v263_v41, %v95_v60 }
  0x97   :  { %v101_v63 = vadd.f32 %v263_v41, %v81_v61 }
  0x98   :  { %v107_v3 = vmax.f32 %v103_v62, 0.0 }
  0x99   :  { %v105_v5 = vmax.f32 %v101_v63, 0.0 }
  0x9a   :  { %v129_v10 = vperm.slane %v107_v3, 0 }
  0x9b   :  { %v115_v11 = vperm.slane %v105_v5, 0 }
  0x9c   :  { %134 = vperm.xlu1 %262, %v129_v10  }
  0x9d   :  { %120 = vperm.xlu2 %260, %v115_v11  }
  0xef   :  { %v114_v13 = vpop.permute.xlu2 %113 }
  0xf0   :  { %v136_v14 = vmul.f32 %v114_v13, %v62_v12 }
  0xf2   :  { %v141_v15 = vsel %vm140_vm1, %v136_v14, 0.0 }
  0xf3   :  { %v142_v16 = vrot.slane %v141_v15, 4 }
  0xf5   :  { %v143_v17 = vadd.f32 %v142_v16, %v141_v15 }
  0xf7   :  { %v144_v18 = vrot.slane %v143_v17, 2  ;;  %v121_v19 = vpop.permute.xlu2 %120 }
  0xf8   :  { %v137_v20 = vmul.f32 %v121_v19, %v62_v12 }
  0xf9   :  { %v145_v21 = vadd.f32 %v144_v18, %v143_v17 }
  0xfa   :  { %v148_v22 = vsel %vm140_vm1, %v137_v20, 0.0 }
  0xfb   :  { %v146_v23 = vrot.slane %v145_v21, 1  ;;  %v149_v24 = vrot.slane %v148_v22, 4 }
  0xfd   :  { %v147_v26 = vadd.f32 %v146_v23, %v145_v21  ;;  %v150_v27 = vadd.f32 %v149_v24, %v148_v22 }
  0xff   :  { %v151_v28 = vrot.slane %v150_v27, 2  ;;  %v173_v29 = vadd.f32 %v264_v25, %v147_v26 }
 0x101   :  { %v152_v30 = vadd.f32 %v151_v28, %v150_v27  ;;  %v177_v31 = vadd.f32 3.0, %v173_v29 }
 0x103   :  { %v153_v32 = vrot.slane %v152_v30, 1  ;;  %v181_v33 = vmax.f32 %v177_v31, 0.0 }
 0x105   :  { %v154_v34 = vadd.f32 %v153_v32, %v152_v30  ;;  %v185_v35 = vmin.f32 %v181_v33, 6.0 }
 0x106   :  { %v128_v36 = vpop.permute.xlu0 %127 }
 0x107   :  { %v138_v37 = vmul.f32 %v128_v36, %v62_v12  ;;  %v189_v38 = vmul.f32 0.16666667, %v185_v35  ;;  %v174_v39 = vadd.f32 %v264_v25, %v154_v34 }
 0x109   :  { %v155_v40 = vsel %vm140_vm1, %v138_v37, 0.0  ;;  %v193_v41 = vperm.slane %v189_v38, 0  ;;  %v178_v42 = vadd.f32 3.0, %v174_v39 }
 0x10a   :  { %v156_v43 = vrot.slane %v155_v40, 4 }
 0x10b   :  { %198 = vperm.xlu2 %260, %v193_v41   ;;  %v182_v44 = vmax.f32 %v178_v42, 0.0 }
 0x10c   :  { %v157_v45 = vadd.f32 %v156_v43, %v155_v40 }
 0x10d   :  { %v186_v46 = vmin.f32 %v182_v44, 6.0 }
 0x10e   :  { %v158_v47 = vrot.slane %v157_v45, 2  ;;  %v135_v48 = vpop.permute.xlu1 %134 }
 0x10f   :  { %v139_v49 = vmul.f32 %v135_v48, %v62_v12  ;;  %v190_v50 = vmul.f32 0.16666667, %v186_v46 }
 0x110   :  { %v159_v51 = vadd.f32 %v158_v47, %v157_v45 }
 0x111   :  { %v162_v52 = vsel %vm140_vm1, %v139_v49, 0.0  ;;  %v200_v53 = vperm.slane %v190_v50, 0 }
 0x112   :  { %v160_v54 = vrot.slane %v159_v51, 1  ;;  %v163_v55 = vrot.slane %v162_v52, 4 }
 0x113   :  { %205 = vperm.xlu2 %260, %v200_v53  }
 0x114   :  { %v161_v56 = vadd.f32 %v160_v54, %v159_v51  ;;  %v164_v57 = vadd.f32 %v163_v55, %v162_v52 }
 0x116   :  { %v165_v58 = vrot.slane %v164_v57, 2  ;;  %v175_v59 = vadd.f32 %v264_v25, %v161_v56 }
 0x118   :  { %v166_v60 = vadd.f32 %v165_v58, %v164_v57  ;;  %v179_v61 = vadd.f32 3.0, %v175_v59 }
 0x11a   :  { %v167_v62 = vrot.slane %v166_v60, 1  ;;  %v183_v63 = vmax.f32 %v179_v61, 0.0 }
 0x11c   :  { %v168_v3 = vadd.f32 %v167_v62, %v166_v60  ;;  %v187_v5 = vmin.f32 %v183_v63, 6.0 }
 0x11e   :  { %v191_v10 = vmul.f32 0.16666667, %v187_v5  ;;  %v176_v11 = vadd.f32 %v264_v25, %v168_v3 }
 0x120   :  { %v207_v12 = vperm.slane %v191_v10, 0  ;;  %v180_v13 = vadd.f32 3.0, %v176_v11 }
 0x122   :  { %212 = vperm.xlu2 %260, %v207_v12   ;;  %v184_v14 = vmax.f32 %v180_v13, 0.0 }
 0x124   :  { %v188_v15 = vmin.f32 %v184_v14, 6.0 }
 0x126   :  { %v192_v16 = vmul.f32 0.16666667, %v188_v15 }
 0x128   :  { %v214_v17 = vperm.slane %v192_v16, 0 }
 0x12a   :  { %219 = vperm.xlu2 %260, %v214_v17  }
 0x165   :  { %v199_v18 = vpop.permute.xlu2 %198 }
 0x166   :  { %v221_v19 = vmul.f32 %v199_v18, %v361_v2  ;;  %v222_v20 = vmul.f32 %v199_v18, %v365_v4 }
 0x168   :  { %229 = vst [vmem:[#allocation5] sm:$0xff] %v221_v19 }
 0x169   :  { %230 = vst [vmem:[#allocation5 + $0x8] sm:$0xff] %v222_v20 }
 0x16d   :  { %v206_v21 = vpop.permute.xlu2 %205 }
 0x16e   :  { %v223_v22 = vmul.f32 %v206_v21, %v373_v8  ;;  %v224_v23 = vmul.f32 %v206_v21, %v375_v9 }
 0x170   :  { %231 = vst [vmem:[#allocation5 + $0x10] sm:$0xff] %v223_v22 }
 0x171   :  { %232 = vst [vmem:[#allocation5 + $0x18] sm:$0xff] %v224_v23 }
 0x17c   :  { %v213_v24 = vpop.permute.xlu2 %212 }
 0x17d   :  { %v225_v25 = vmul.f32 %v213_v24, %v357_v0  ;;  %v226_v26 = vmul.f32 %v213_v24, %v359_v1 }
 0x17f   :  { %233 = vst [vmem:[#allocation5 + $0x20] sm:$0xff] %v225_v25 }
 0x180   :  { %234 = vst [vmem:[#allocation5 + $0x28] sm:$0xff] %v226_v26 }
 0x184   :  { %v220_v2 = vpop.permute.xlu2 %219 }
 0x185   :  { %v227_v4 = vmul.f32 %v220_v2, %v369_v6  ;;  %v228_v8 = vmul.f32 %v220_v2, %v371_v7 }
 0x187   :  { %235 = vst [vmem:[#allocation5 + $0x30] sm:$0xff] %v227_v4 }
 0x188   :  { %236 = vst [vmem:[#allocation5 + $0x38] sm:$0xff] %v228_v8 }
 0x189   :  { %249 = dma.vmem_to_hbm [thread:$0]  %s242_s4, 1024, %s244_s7, [#allocation4], %s318_s23, %s318_s23, %s319_s24  }
 0x18a   :  { %315 = dma.done.wait [#allocation4], 1024  }
 0x18b   :  { %316 = vsyncadd [#allocation4], 4294966272 }
 0x18c   :  { %254 = vsyncpa [#allocation3], 1 }
 0x18d   :  { %255 = vsyncpa [#allocation4], 1 }

</bundles_post_ra>
